<compile_context>
chip_gen: v7x
topology: tpu7x:2x2x1
jax: 0.10.0
libtpu: 0.0.40
codegen_flags: <defaults>
</compile_context>

<pallas_src>
import jax
import jax.numpy as jnp
from jax import lax
from jax.experimental import pallas as pl
from jax.experimental.pallas import tpu as pltpu

INPUT_SIZE = 3
HIDDEN = 32


def rnn_kernel(xw_ref, h0_ref, whh_ref, wout_ref, bout_ref,
               y_ref, hT_ref, hall_ref):
    """Single invocation: full-length recurrence, hidden state carried as a value."""
    T = xw_ref.shape[0]
    whh = whh_ref[...]                                   # (H, H), VMEM-resident

    def step(t, h):
        # h_t = tanh(xw_t + h_{t-1} @ W_hh^T); xw_t already holds x_t@W_ih^T + b_ih + b_hh
        h_new = jnp.tanh(xw_ref[t] +
                         jnp.dot(h, whh, preferred_element_type=jnp.float32))
        hall_ref[t] = h_new
        return h_new

    h_last = lax.fori_loop(0, T, step, h0_ref[...].astype(jnp.float32),
                           unroll=True)

    hT_ref[...] = h_last.astype(hT_ref.dtype)

    # Per-timestep Linear(32, 1), applied once to all accumulated hidden states:
    # y[t, b] = sum_h h_all[t, b, h] * w_out[h] + b_out
    hall = hall_ref[...]                                 # (T, B, H)
    w = wout_ref[...]                                    # (1, H)
    y = jnp.sum(hall * w[None, :, :], axis=-1) + bout_ref[...]   # (T, B)
    y_ref[...] = y.astype(y_ref.dtype)


@jax.jit
def rnn_forward(xin, h0, params):
    """xin: (B, T, I) batch_first; h0: (1, B, H). Returns ((B, T, 1), (1, B, H))."""
    B, T, I = xin.shape
    H = h0.shape[-1]
    w_ih, w_hh, b_ih, b_hh, w_out, b_out = params

    # Hoisted non-recurrent input projection: one batched (T*B, I) @ (I, H) matmul.
    x_tbi = jnp.transpose(xin, (1, 0, 2)).astype(jnp.float32)        # (T, B, I)
    xw = jnp.einsum('tbi,hi->tbh', x_tbi, w_ih) + (b_ih + b_hh)      # (T, B, H)

    whh_t = w_hh.T                                                   # (H, H)
    wout_row = w_out.reshape(1, H)                                   # (1, H)
    bout = b_out.reshape(1, 1)                                       # (1, 1)
    h0_bh = h0[0]                                                    # (B, H)

    y_tb, hT = pl.pallas_call(
        rnn_kernel,
        grid=(1,),
        in_specs=[
            pl.BlockSpec((T, B, H), lambda i: (0, 0, 0)),   # xw (whole seq in VMEM)
            pl.BlockSpec((B, H), lambda i: (0, 0)),         # h0
            pl.BlockSpec((H, H), lambda i: (0, 0)),         # W_hh^T
            pl.BlockSpec((1, H), lambda i: (0, 0)),         # W_out row
            pl.BlockSpec((1, 1), lambda i: (0, 0)),         # b_out
        ],
        out_specs=[
            pl.BlockSpec((T, B), lambda i: (0, 0)),         # y, time-major
            pl.BlockSpec((B, H), lambda i: (0, 0)),         # final hidden
        ],
        out_shape=[
            jax.ShapeDtypeStruct((T, B), jnp.float32),
            jax.ShapeDtypeStruct((B, H), h0.dtype),
        ],
        scratch_shapes=[pltpu.VMEM((T, B, H), jnp.float32)],
        compiler_params=pltpu.CompilerParams(
            dimension_semantics=("arbitrary",)),
    )(xw, h0_bh, whh_t, wout_row, bout)

    y = jnp.transpose(y_tb, (1, 0))[:, :, None].astype(xin.dtype)    # (B, T, 1)
    return y, hT[None]                                               # (1, B, H)


def ref_forward(xin, h0, params):
    """Pure-JAX reference matching PyTorch nn.RNN(tanh) + Linear semantics."""
    w_ih, w_hh, b_ih, b_hh, w_out, b_out = params

    def step(h, x_t):
        h_new = jnp.tanh(x_t @ w_ih.T + b_ih + h @ w_hh.T + b_hh)
        y_t = h_new @ w_out.T + b_out
        return h_new, y_t

    hT, ys = lax.scan(step, h0[0], jnp.transpose(xin, (1, 0, 2)))
    return jnp.transpose(ys, (1, 0, 2)), hT[None]


if __name__ == "__main__":
    B, T, I, H = 2, 8, INPUT_SIZE, HIDDEN
    key = jax.random.PRNGKey(0)
    k = jax.random.split(key, 8)

    # Deterministic parameter init (matches PyTorch's U(-1/sqrt(H), 1/sqrt(H)) scheme).
    bound = 1.0 / float(jnp.sqrt(jnp.float32(H)))
    w_ih = jax.random.uniform(k[0], (H, I), jnp.float32, -bound, bound)
    w_hh = jax.random.uniform(k[1], (H, H), jnp.float32, -bound, bound)
    b_ih = jax.random.uniform(k[2], (H,), jnp.float32, -bound, bound)
    b_hh = jax.random.uniform(k[3], (H,), jnp.float32, -bound, bound)
    w_out = jax.random.uniform(k[4], (1, H), jnp.float32, -bound, bound)
    b_out = jax.random.uniform(k[5], (1,), jnp.float32, -bound, bound)
    params = (w_ih, w_hh, b_ih, b_hh, w_out, b_out)

    xin = jax.random.normal(k[6], (B, T, I), jnp.float32)
    h0 = jax.random.normal(k[7], (1, B, H), jnp.float32)

    y, hT = jax.block_until_ready(rnn_forward(xin, h0, params))
    y_exp, hT_exp = ref_forward(xin, h0, params)

    assert y.shape == (B, T, 1) and hT.shape == (1, B, H)
    assert jnp.allclose(y, y_exp, atol=1e-5), "output mismatch vs reference"
    assert jnp.allclose(hT, hT_exp, atol=1e-5), "hidden-state mismatch vs reference"
    print("KERNEL_OK")
</pallas_src>

<mosaic_0001>
module attributes {stable_mosaic.version = 11 : i64} {
  func.func @rnn_kernel(%arg0: i32, %arg1: memref<8x2x32xf32, #tpu.memory_space<vmem>>, %arg2: memref<2x32xf32, #tpu.memory_space<vmem>>, %arg3: memref<32x32xf32, #tpu.memory_space<vmem>>, %arg4: memref<1x32xf32, #tpu.memory_space<vmem>>, %arg5: memref<1x1xf32, #tpu.memory_space<vmem>>, %arg6: memref<8x2xf32, #tpu.memory_space<vmem>>, %arg7: memref<2x32xf32, #tpu.memory_space<vmem>>, %arg8: memref<8x2x32xf32, #tpu.memory_space<vmem>>) attributes {dimension_semantics = [#tpu.dimension_semantics<arbitrary>], iteration_bounds = array<i64: 1>, scalar_prefetch = 0 : i64, scratch_operands = 1 : i64, tpu.core_type = #tpu.core_type<tc>, window_params = [{pipeline_mode = #tpu.pipeline_mode<synchronous>, transform_indices = @transform_0, window_bounds = array<i64: 8, 2, 32>}, {pipeline_mode = #tpu.pipeline_mode<synchronous>, transform_indices = @transform_1, window_bounds = array<i64: 2, 32>}, {pipeline_mode = #tpu.pipeline_mode<synchronous>, transform_indices = @transform_2, window_bounds = array<i64: 32, 32>}, {pipeline_mode = #tpu.pipeline_mode<synchronous>, transform_indices = @transform_3, window_bounds = array<i64: 1, 32>}, {pipeline_mode = #tpu.pipeline_mode<synchronous>, transform_indices = @transform_4, window_bounds = array<i64: 1, 1>}, {pipeline_mode = #tpu.pipeline_mode<synchronous>, transform_indices = @transform_5, window_bounds = array<i64: 8, 2>}, {pipeline_mode = #tpu.pipeline_mode<synchronous>, transform_indices = @transform_6, window_bounds = array<i64: 2, 32>}]} {
    %c0 = arith.constant 0 : index
    %c0_0 = arith.constant 0 : index
    %0 = vector.load %arg3[%c0, %c0_0] : memref<32x32xf32, #tpu.memory_space<vmem>>, vector<32x32xf32>
    %c0_1 = arith.constant 0 : index
    %c0_2 = arith.constant 0 : index
    %1 = vector.load %arg2[%c0_1, %c0_2] : memref<2x32xf32, #tpu.memory_space<vmem>>, vector<2x32xf32>
    %c0_i32 = arith.constant 0 : i32
    %2 = arith.index_cast %c0_i32 : i32 to index
    %c0_3 = arith.constant 0 : index
    %c0_4 = arith.constant 0 : index
    %3 = vector.load %arg1[%2, %c0_3, %c0_4] : memref<8x2x32xf32, #tpu.memory_space<vmem>>, vector<1x2x32xf32>
    %4 = vector.shape_cast %3 : vector<1x2x32xf32> to vector<2x32xf32>
    %cst = arith.constant dense<0.000000e+00> : vector<2x32xf32>
    %5 = tpu.matmul %1, %0, %cst {dimension_numbers = #tpu.dot_dimension_numbers<[1], [0], [0], [1], [0, 0, 1, 1], [], []>} : vector<2x32xf32>, vector<32x32xf32>, vector<2x32xf32> -> vector<2x32xf32>
    %6 = arith.addf %4, %5 : vector<2x32xf32>
    %7 = math.tanh %6 : vector<2x32xf32>
    %8 = arith.index_cast %c0_i32 : i32 to index
    %c0_5 = arith.constant 0 : index
    %c0_6 = arith.constant 0 : index
    %9 = vector.load %arg8[%8, %c0_5, %c0_6] : memref<8x2x32xf32, #tpu.memory_space<vmem>>, vector<1x2x32xf32>
    %10 = vector.shape_cast %9 : vector<1x2x32xf32> to vector<2x32xf32>
    %11 = vector.shape_cast %7 : vector<2x32xf32> to vector<1x2x32xf32>
    tpu.vector_store %arg8[%8, %c0_5, %c0_6], %11 {strides = array<i32>} : memref<8x2x32xf32, #tpu.memory_space<vmem>>, vector<1x2x32xf32>,
    %c1_i32 = arith.constant 1 : i32
    %12 = arith.index_cast %c1_i32 : i32 to index
    %c0_7 = arith.constant 0 : index
    %c0_8 = arith.constant 0 : index
    %13 = vector.load %arg1[%12, %c0_7, %c0_8] : memref<8x2x32xf32, #tpu.memory_space<vmem>>, vector<1x2x32xf32>
    %14 = vector.shape_cast %13 : vector<1x2x32xf32> to vector<2x32xf32>
    %cst_9 = arith.constant dense<0.000000e+00> : vector<2x32xf32>
    %15 = tpu.matmul %7, %0, %cst_9 {dimension_numbers = #tpu.dot_dimension_numbers<[1], [0], [0], [1], [0, 0, 1, 1], [], []>} : vector<2x32xf32>, vector<32x32xf32>, vector<2x32xf32> -> vector<2x32xf32>
    %16 = arith.addf %14, %15 : vector<2x32xf32>
    %17 = math.tanh %16 : vector<2x32xf32>
    %18 = arith.index_cast %c1_i32 : i32 to index
    %c0_10 = arith.constant 0 : index
    %c0_11 = arith.constant 0 : index
    %19 = vector.load %arg8[%18, %c0_10, %c0_11] : memref<8x2x32xf32, #tpu.memory_space<vmem>>, vector<1x2x32xf32>
    %20 = vector.shape_cast %19 : vector<1x2x32xf32> to vector<2x32xf32>
    %21 = vector.shape_cast %17 : vector<2x32xf32> to vector<1x2x32xf32>
    tpu.vector_store %arg8[%18, %c0_10, %c0_11], %21 {strides = array<i32>} : memref<8x2x32xf32, #tpu.memory_space<vmem>>, vector<1x2x32xf32>,
    %c2_i32 = arith.constant 2 : i32
    %22 = arith.index_cast %c2_i32 : i32 to index
    %c0_12 = arith.constant 0 : index
    %c0_13 = arith.constant 0 : index
    %23 = vector.load %arg1[%22, %c0_12, %c0_13] : memref<8x2x32xf32, #tpu.memory_space<vmem>>, vector<1x2x32xf32>
    %24 = vector.shape_cast %23 : vector<1x2x32xf32> to vector<2x32xf32>
    %cst_14 = arith.constant dense<0.000000e+00> : vector<2x32xf32>
    %25 = tpu.matmul %17, %0, %cst_14 {dimension_numbers = #tpu.dot_dimension_numbers<[1], [0], [0], [1], [0, 0, 1, 1], [], []>} : vector<2x32xf32>, vector<32x32xf32>, vector<2x32xf32> -> vector<2x32xf32>
    %26 = arith.addf %24, %25 : vector<2x32xf32>
    %27 = math.tanh %26 : vector<2x32xf32>
    %28 = arith.index_cast %c2_i32 : i32 to index
    %c0_15 = arith.constant 0 : index
    %c0_16 = arith.constant 0 : index
    %29 = vector.load %arg8[%28, %c0_15, %c0_16] : memref<8x2x32xf32, #tpu.memory_space<vmem>>, vector<1x2x32xf32>
    %30 = vector.shape_cast %29 : vector<1x2x32xf32> to vector<2x32xf32>
    %31 = vector.shape_cast %27 : vector<2x32xf32> to vector<1x2x32xf32>
    tpu.vector_store %arg8[%28, %c0_15, %c0_16], %31 {strides = array<i32>} : memref<8x2x32xf32, #tpu.memory_space<vmem>>, vector<1x2x32xf32>,
    %c3_i32 = arith.constant 3 : i32
    %32 = arith.index_cast %c3_i32 : i32 to index
    %c0_17 = arith.constant 0 : index
    %c0_18 = arith.constant 0 : index
    %33 = vector.load %arg1[%32, %c0_17, %c0_18] : memref<8x2x32xf32, #tpu.memory_space<vmem>>, vector<1x2x32xf32>
    %34 = vector.shape_cast %33 : vector<1x2x32xf32> to vector<2x32xf32>
    %cst_19 = arith.constant dense<0.000000e+00> : vector<2x32xf32>
    %35 = tpu.matmul %27, %0, %cst_19 {dimension_numbers = #tpu.dot_dimension_numbers<[1], [0], [0], [1], [0, 0, 1, 1], [], []>} : vector<2x32xf32>, vector<32x32xf32>, vector<2x32xf32> -> vector<2x32xf32>
    %36 = arith.addf %34, %35 : vector<2x32xf32>
    %37 = math.tanh %36 : vector<2x32xf32>
    %38 = arith.index_cast %c3_i32 : i32 to index
    %c0_20 = arith.constant 0 : index
    %c0_21 = arith.constant 0 : index
    %39 = vector.load %arg8[%38, %c0_20, %c0_21] : memref<8x2x32xf32, #tpu.memory_space<vmem>>, vector<1x2x32xf32>
    %40 = vector.shape_cast %39 : vector<1x2x32xf32> to vector<2x32xf32>
    %41 = vector.shape_cast %37 : vector<2x32xf32> to vector<1x2x32xf32>
    tpu.vector_store %arg8[%38, %c0_20, %c0_21], %41 {strides = array<i32>} : memref<8x2x32xf32, #tpu.memory_space<vmem>>, vector<1x2x32xf32>,
    %c4_i32 = arith.constant 4 : i32
    %42 = arith.index_cast %c4_i32 : i32 to index
    %c0_22 = arith.constant 0 : index
    %c0_23 = arith.constant 0 : index
    %43 = vector.load %arg1[%42, %c0_22, %c0_23] : memref<8x2x32xf32, #tpu.memory_space<vmem>>, vector<1x2x32xf32>
    %44 = vector.shape_cast %43 : vector<1x2x32xf32> to vector<2x32xf32>
    %cst_24 = arith.constant dense<0.000000e+00> : vector<2x32xf32>
    %45 = tpu.matmul %37, %0, %cst_24 {dimension_numbers = #tpu.dot_dimension_numbers<[1], [0], [0], [1], [0, 0, 1, 1], [], []>} : vector<2x32xf32>, vector<32x32xf32>, vector<2x32xf32> -> vector<2x32xf32>
    %46 = arith.addf %44, %45 : vector<2x32xf32>
    %47 = math.tanh %46 : vector<2x32xf32>
    %48 = arith.index_cast %c4_i32 : i32 to index
    %c0_25 = arith.constant 0 : index
    %c0_26 = arith.constant 0 : index
    %49 = vector.load %arg8[%48, %c0_25, %c0_26] : memref<8x2x32xf32, #tpu.memory_space<vmem>>, vector<1x2x32xf32>
    %50 = vector.shape_cast %49 : vector<1x2x32xf32> to vector<2x32xf32>
    %51 = vector.shape_cast %47 : vector<2x32xf32> to vector<1x2x32xf32>
    tpu.vector_store %arg8[%48, %c0_25, %c0_26], %51 {strides = array<i32>} : memref<8x2x32xf32, #tpu.memory_space<vmem>>, vector<1x2x32xf32>,
    %c5_i32 = arith.constant 5 : i32
    %52 = arith.index_cast %c5_i32 : i32 to index
    %c0_27 = arith.constant 0 : index
    %c0_28 = arith.constant 0 : index
    %53 = vector.load %arg1[%52, %c0_27, %c0_28] : memref<8x2x32xf32, #tpu.memory_space<vmem>>, vector<1x2x32xf32>
    %54 = vector.shape_cast %53 : vector<1x2x32xf32> to vector<2x32xf32>
    %cst_29 = arith.constant dense<0.000000e+00> : vector<2x32xf32>
    %55 = tpu.matmul %47, %0, %cst_29 {dimension_numbers = #tpu.dot_dimension_numbers<[1], [0], [0], [1], [0, 0, 1, 1], [], []>} : vector<2x32xf32>, vector<32x32xf32>, vector<2x32xf32> -> vector<2x32xf32>
    %56 = arith.addf %54, %55 : vector<2x32xf32>
    %57 = math.tanh %56 : vector<2x32xf32>
    %58 = arith.index_cast %c5_i32 : i32 to index
    %c0_30 = arith.constant 0 : index
    %c0_31 = arith.constant 0 : index
    %59 = vector.load %arg8[%58, %c0_30, %c0_31] : memref<8x2x32xf32, #tpu.memory_space<vmem>>, vector<1x2x32xf32>
    %60 = vector.shape_cast %59 : vector<1x2x32xf32> to vector<2x32xf32>
    %61 = vector.shape_cast %57 : vector<2x32xf32> to vector<1x2x32xf32>
    tpu.vector_store %arg8[%58, %c0_30, %c0_31], %61 {strides = array<i32>} : memref<8x2x32xf32, #tpu.memory_space<vmem>>, vector<1x2x32xf32>,
    %c6_i32 = arith.constant 6 : i32
    %62 = arith.index_cast %c6_i32 : i32 to index
    %c0_32 = arith.constant 0 : index
    %c0_33 = arith.constant 0 : index
    %63 = vector.load %arg1[%62, %c0_32, %c0_33] : memref<8x2x32xf32, #tpu.memory_space<vmem>>, vector<1x2x32xf32>
    %64 = vector.shape_cast %63 : vector<1x2x32xf32> to vector<2x32xf32>
    %cst_34 = arith.constant dense<0.000000e+00> : vector<2x32xf32>
    %65 = tpu.matmul %57, %0, %cst_34 {dimension_numbers = #tpu.dot_dimension_numbers<[1], [0], [0], [1], [0, 0, 1, 1], [], []>} : vector<2x32xf32>, vector<32x32xf32>, vector<2x32xf32> -> vector<2x32xf32>
    %66 = arith.addf %64, %65 : vector<2x32xf32>
    %67 = math.tanh %66 : vector<2x32xf32>
    %68 = arith.index_cast %c6_i32 : i32 to index
    %c0_35 = arith.constant 0 : index
    %c0_36 = arith.constant 0 : index
    %69 = vector.load %arg8[%68, %c0_35, %c0_36] : memref<8x2x32xf32, #tpu.memory_space<vmem>>, vector<1x2x32xf32>
    %70 = vector.shape_cast %69 : vector<1x2x32xf32> to vector<2x32xf32>
    %71 = vector.shape_cast %67 : vector<2x32xf32> to vector<1x2x32xf32>
    tpu.vector_store %arg8[%68, %c0_35, %c0_36], %71 {strides = array<i32>} : memref<8x2x32xf32, #tpu.memory_space<vmem>>, vector<1x2x32xf32>,
    %c7_i32 = arith.constant 7 : i32
    %72 = arith.index_cast %c7_i32 : i32 to index
    %c0_37 = arith.constant 0 : index
    %c0_38 = arith.constant 0 : index
    %73 = vector.load %arg1[%72, %c0_37, %c0_38] : memref<8x2x32xf32, #tpu.memory_space<vmem>>, vector<1x2x32xf32>
    %74 = vector.shape_cast %73 : vector<1x2x32xf32> to vector<2x32xf32>
    %cst_39 = arith.constant dense<0.000000e+00> : vector<2x32xf32>
    %75 = tpu.matmul %67, %0, %cst_39 {dimension_numbers = #tpu.dot_dimension_numbers<[1], [0], [0], [1], [0, 0, 1, 1], [], []>} : vector<2x32xf32>, vector<32x32xf32>, vector<2x32xf32> -> vector<2x32xf32>
    %76 = arith.addf %74, %75 : vector<2x32xf32>
    %77 = math.tanh %76 : vector<2x32xf32>
    %78 = arith.index_cast %c7_i32 : i32 to index
    %c0_40 = arith.constant 0 : index
    %c0_41 = arith.constant 0 : index
    %79 = vector.load %arg8[%78, %c0_40, %c0_41] : memref<8x2x32xf32, #tpu.memory_space<vmem>>, vector<1x2x32xf32>
    %80 = vector.shape_cast %79 : vector<1x2x32xf32> to vector<2x32xf32>
    %81 = vector.shape_cast %77 : vector<2x32xf32> to vector<1x2x32xf32>
    tpu.vector_store %arg8[%78, %c0_40, %c0_41], %81 {strides = array<i32>} : memref<8x2x32xf32, #tpu.memory_space<vmem>>, vector<1x2x32xf32>,
    %c8_i32 = arith.constant 8 : i32
    %c0_42 = arith.constant 0 : index
    %c0_43 = arith.constant 0 : index
    %82 = vector.load %arg7[%c0_42, %c0_43] : memref<2x32xf32, #tpu.memory_space<vmem>>, vector<2x32xf32>
    tpu.vector_store %arg7[%c0_42, %c0_43], %77 {strides = array<i32>} : memref<2x32xf32, #tpu.memory_space<vmem>>, vector<2x32xf32>,
    %c0_44 = arith.constant 0 : index
    %c0_45 = arith.constant 0 : index
    %c0_46 = arith.constant 0 : index
    %83 = vector.load %arg8[%c0_44, %c0_45, %c0_46] : memref<8x2x32xf32, #tpu.memory_space<vmem>>, vector<8x2x32xf32>
    %c0_47 = arith.constant 0 : index
    %c0_48 = arith.constant 0 : index
    %84 = vector.load %arg4[%c0_47, %c0_48] : memref<1x32xf32, #tpu.memory_space<vmem>>, vector<1x32xf32>
    %85 = vector.shape_cast %84 : vector<1x32xf32> to vector<1x1x32xf32>
    %86 = vector.broadcast %85 : vector<1x1x32xf32> to vector<8x2x32xf32>
    %87 = arith.mulf %83, %86 : vector<8x2x32xf32>
    %cst_49 = arith.constant dense<0.000000e+00> : vector<8x2xf32>
    %88 = vector.multi_reduction <add>, %87, %cst_49 [2] : vector<8x2x32xf32> to vector<8x2xf32>
    %c0_50 = arith.constant 0 : index
    %c0_51 = arith.constant 0 : index
    %89 = vector.load %arg5[%c0_50, %c0_51] : memref<1x1xf32, #tpu.memory_space<vmem>>, vector<1x1xf32>
    %90 = vector.broadcast %89 : vector<1x1xf32> to vector<8x2xf32>
    %91 = arith.addf %88, %90 : vector<8x2xf32>
    %c0_52 = arith.constant 0 : index
    %c0_53 = arith.constant 0 : index
    %92 = vector.load %arg6[%c0_52, %c0_53] : memref<8x2xf32, #tpu.memory_space<vmem>>, vector<8x2xf32>
    tpu.vector_store %arg6[%c0_52, %c0_53], %91 {strides = array<i32>} : memref<8x2xf32, #tpu.memory_space<vmem>>, vector<8x2xf32>,
    return
  }
  func.func @transform_0(%arg0: i32) -> (i32, i32, i32) {
    %c0_i32 = arith.constant 0 : i32
    %c0_i32_0 = arith.constant 0 : i32
    %c0_i32_1 = arith.constant 0 : i32
    %c0_i32_2 = arith.constant 0 : i32
    return %c0_i32, %c0_i32_0, %c0_i32_1 : i32, i32, i32
  }
  func.func @transform_1(%arg0: i32) -> (i32, i32) {
    %c0_i32 = arith.constant 0 : i32
    %c0_i32_0 = arith.constant 0 : i32
    %c0_i32_1 = arith.constant 0 : i32
    return %c0_i32, %c0_i32_0 : i32, i32
  }
  func.func @transform_2(%arg0: i32) -> (i32, i32) {
    %c0_i32 = arith.constant 0 : i32
    %c0_i32_0 = arith.constant 0 : i32
    %c0_i32_1 = arith.constant 0 : i32
    return %c0_i32, %c0_i32_0 : i32, i32
  }
  func.func @transform_3(%arg0: i32) -> (i32, i32) {
    %c0_i32 = arith.constant 0 : i32
    %c0_i32_0 = arith.constant 0 : i32
    %c0_i32_1 = arith.constant 0 : i32
    return %c0_i32, %c0_i32_0 : i32, i32
  }
  func.func @transform_4(%arg0: i32) -> (i32, i32) {
    %c0_i32 = arith.constant 0 : i32
    %c0_i32_0 = arith.constant 0 : i32
    %c0_i32_1 = arith.constant 0 : i32
    return %c0_i32, %c0_i32_0 : i32, i32
  }
  func.func @transform_5(%arg0: i32) -> (i32, i32) {
    %c0_i32 = arith.constant 0 : i32
    %c0_i32_0 = arith.constant 0 : i32
    %c0_i32_1 = arith.constant 0 : i32
    return %c0_i32, %c0_i32_0 : i32, i32
  }
  func.func @transform_6(%arg0: i32) -> (i32, i32) {
    %c0_i32 = arith.constant 0 : i32
    %c0_i32_0 = arith.constant 0 : i32
    %c0_i32_1 = arith.constant 0 : i32
    return %c0_i32, %c0_i32_0 : i32, i32
  }
}

</mosaic_0001>

<bundles_post_ra>
// kernel: rnn_forward.1
= control target key start
LH: loop header
LB: loop body
LE: loop exit
PB: predicated region body
PF: predicated region fallthrough
CT: control target
= control target key end

     0   :  { %s1231_s0 = inlined_call_operand.vmem [shape: f32[8,2,32], index: 0, kind: input, shape index: {}]   ;;  %s1232_s1 = inlined_call_operand.vmem [shape: f32[2,32], index: 1, kind: input, shape index: {}]   ;;  %s1233_s2 = inlined_call_operand.vmem [shape: f32[32,32], index: 2, kind: input, shape index: {}]   ;;  %s1234_s3 = inlined_call_operand.vmem [shape: f32[1,32], index: 3, kind: input, shape index: {}]   ;;  %s1235_s4 = inlined_call_operand.<no memory space> [shape: f32[1,1], index: 4, kind: input, shape index: {}]   ;;  %s1236_s5 = inlined_call_operand.vmem [shape: f32[8,2], index: 5, kind: output, shape index: {0}]   ;;  %s1237_s6 = inlined_call_operand.hbm [shape: f32[2,32], index: 6, kind: output, shape index: {1}]  }
   0x1   :  { %v12_v0 = vstv %s1235_s4 }
   0x2   :  { %13 = vst [vmem:[#allocation3] sm:$0x1] %v12_v0 }
   0x3   :  { %v25_v1 = vld [vmem:[%s1233_s2] sm:$0xff]  ;;  %v26_v2 = vld [vmem:[%s1233_s2 + $0x8] sm:$0xff]  ;;  %v27_v3 = vld [vmem:[%s1233_s2 + $0x10] sm:$0xff]  ;;  %v1044_v4 = vmov 0.0|0.0   ;;  %vm1045_vm0 = vmmov 0   ;;  %v1046_v7 = vmov 0.0  }
   0x4   :  { %950 = vmatprep.subr.bf16.mxu0 %v1044_v4  ;;  %v1097_v5 = vpack.c.bf16 %v26_v2, %v25_v1  ;;  %v28_v6 = vld [vmem:[%s1233_s2 + $0x18] sm:$0xff]  ;;  %870 = vmatprep.mubr.msk.f32.mxu0 %vm1045_vm0, %v1046_v7 }
   0x5   :  { %956 = vmatprep.subr.bf16.mxu1 %v1044_v4  ;;  %881 = vmatprep.mubr.msk.f32.mxu1 %vm1045_vm0, %v1046_v7 }
   0x6   :  { %14 = vsyncpa [#allocation5], 0  ;;  %952 = vmatpush3.bf16.msra.mxu0 %v1097_v5  ;;  %v1108_v8 = vpack.c.bf16 %v28_v6, %v27_v3  ;;  %958 = vmatpush3.bf16.msra.mxu1 %v1097_v5  ;;  %v29_v9 = vld [vmem:[%s1232_s1] sm:$0x3]  ;;  %vm31_vm1 = vcmask 261120   ;;  %vm107_vm2 = vcmask 254976  }
   0x7   :  { %953 = vmatprep.subr.bf16.mxu0 %v1044_v4  ;;  %959 = vmatprep.subr.bf16.mxu1 %v1044_v4  ;;  %v30_v10 = vld [vmem:[%s1231_s0] sm:$0x3]  ;;  %v806_v19 = vld [vmem:[%s1231_s0 + $0x2] sm:$0x3]  ;;  %v808_v27 = vld [vmem:[%s1231_s0 + $0x4] sm:$0x3] }
   0x8   :  { %v1139_v15 = vld [vmem:[%s1234_s3] ss:$0 sm:$0xff]  ;;  %v810_v35 = vld [vmem:[%s1231_s0 + $0x6] sm:$0x3]  ;;  %v812_v43 = vld [vmem:[%s1231_s0 + $0x8] sm:$0x3] }
   0x9   :  { %v814_v51 = vld [vmem:[%s1231_s0 + $0xa] sm:$0x3]  ;;  %v1047_v59 = vmov 0   ;;  %v816_v60 = vld [vmem:[%s1231_s0 + $0xc] sm:$0x3]  ;;  %s1048_s23 = smov [#allocation4]  }
   0xa   :  { %955 = vmatpush3.bf16.msra.mxu0 %v1108_v8  ;;  %961 = vmatpush3.bf16.msra.mxu1 %v1108_v8  ;;  %s795_s24 = sshll.u32 %s1048_s23, 4  ;;  %s796_s24 = int_to_ptr.vmem [resolvable:$true] %s795_s24 }
   0xb   :  { %962 = vmatprep.subr.bf16.mxu0 %v1044_v4  ;;  %968 = vmatprep.subr.bf16.mxu1 %v1044_v4  ;;  %s1020_s25 = scalar_lea.vmem %s796_s24, 32  ;;  %p1025_p1 = scmp.lt.s32.totalorder %s796_s24, %s796_s24 }
   0xc   :  { %1003 = vset.pattern.permute.xlu0 %v1047_v59  ;;  %p1021_p0 = scmp.ne.s32.totalorder %s796_s24, %s1020_s25  ;;  %p1026_p2 = scmp.lt.s32.totalorder %s1020_s25, %s1020_s25 }
   0xd   :  { %871 = vmatmul.mubr.msk.f32.vlgmr.msra.gmra.mrb[0].mxu0 %vm31_vm1, %v29_v9 }
   0xe   :  { %964 = vmatpush3.bf16.msra.mxu0 %v1097_v5  ;;  %892 = vmatprep.mubr.msk.f32.mxu0 %vm1045_vm0, %v1046_v7  ;;  %p1027_p3 = por %p1026_p2, %p1025_p1 }
   0xf   :  { %965 = vmatprep.subr.bf16.mxu0 %v1044_v4 }
  0x10   :  { %p1028_p4 = pnand %p1027_p3, %p1021_p0 }
  0x12   :  { %967 = vmatpush3.bf16.msra.mxu0 %v1108_v8 }
  0x13   :  { %974 = vmatprep.subr.bf16.mxu0 %v1044_v4 }
  0xe0   :  { %v101_v11 = vpop.f32.mrb[0].mxu0 }
  0xe1   :  { %v105_v12 = vadd.f32 %v101_v11, %v30_v10  ;;  %v872_v13 = vpop.f32.mrb[1].mxu0 }
  0xe3   :  { %1004 = vtanh.f32 %v105_v12 }
  0xed   :  { %v1005_v14 = vpop.eup %1004 }
  0xee   :  { %108 = vst.msk [vmem:[#allocation2] sm:$0x3] %vm107_vm2, %v1005_v14  ;;  %882 = vmatmul.mubr.msk.f32.vlgmr.msra.gmra.mrb[0].mxu1 %vm31_vm1, %v1005_v14 }
  0xef   :  { %970 = vmatpush3.bf16.msra.mxu1 %v1097_v5  ;;  %903 = vmatprep.mubr.msk.f32.mxu1 %vm1045_vm0, %v1046_v7 }
  0xf0   :  { %971 = vmatprep.subr.bf16.mxu1 %v1044_v4 }
  0xf3   :  { %973 = vmatpush3.bf16.msra.mxu1 %v1108_v8 }
  0xf4   :  { %980 = vmatprep.subr.bf16.mxu1 %v1044_v4 }
  0xf5   :  { %v663_v16 = vld [vmem:[#allocation2] sm:$0x3] }
  0xf6   :  { %v678_v17 = vmul.f32 %v1139_v15, %v663_v16 }
  0xf8   :  { %v686_v18 = vsel %vm107_vm2, %v678_v17, 0.0 }
  0xf9   :  { %687 = vadd.xlane.f32.xlu0 %v686_v18 }
 0x1c1   :  { %v180_v20 = vpop.f32.mrb[0].mxu1 }
 0x1c2   :  { %v184_v21 = vadd.f32 %v806_v19, %v180_v20  ;;  %v883_v22 = vpop.f32.mrb[1].mxu1 }
 0x1c4   :  { %1006 = vtanh.f32 %v184_v21 }
 0x1ce   :  { %v1007_v23 = vpop.eup %1006 }
 0x1cf   :  { %187 = vst.msk [vmem:[#allocation2 + $0x2] sm:$0x3] %vm107_vm2, %v1007_v23  ;;  %893 = vmatmul.mubr.msk.f32.vlgmr.msra.gmra.mrb[2].mxu0 %vm31_vm1, %v1007_v23 }
 0x1d0   :  { %976 = vmatpush3.bf16.msra.mxu0 %v1097_v5  ;;  %914 = vmatprep.mubr.msk.f32.mxu0 %vm1045_vm0, %v1046_v7 }
 0x1d1   :  { %977 = vmatprep.subr.bf16.mxu0 %v1044_v4 }
 0x1d4   :  { %979 = vmatpush3.bf16.msra.mxu0 %v1108_v8 }
 0x1d5   :  { %986 = vmatprep.subr.bf16.mxu0 %v1044_v4 }
 0x1d6   :  { %v664_v24 = vld [vmem:[#allocation2 + $0x2] sm:$0x3] }
 0x1d7   :  { %v679_v25 = vmul.f32 %v1139_v15, %v664_v24 }
 0x1d9   :  { %v689_v26 = vsel %vm107_vm2, %v679_v25, 0.0 }
 0x1da   :  { %690 = vadd.xlane.f32.xlu0 %v689_v26 }
 0x2a2   :  { %v259_v28 = vpop.f32.mrb[2].mxu0 }
 0x2a3   :  { %v263_v29 = vadd.f32 %v808_v27, %v259_v28  ;;  %v894_v30 = vpop.f32.mrb[3].mxu0 }
 0x2a5   :  { %1008 = vtanh.f32 %v263_v29 }
 0x2af   :  { %v1009_v31 = vpop.eup %1008 }
 0x2b0   :  { %266 = vst.msk [vmem:[#allocation2 + $0x4] sm:$0x3] %vm107_vm2, %v1009_v31  ;;  %904 = vmatmul.mubr.msk.f32.vlgmr.msra.gmra.mrb[2].mxu1 %vm31_vm1, %v1009_v31 }
 0x2b1   :  { %982 = vmatpush3.bf16.msra.mxu1 %v1097_v5  ;;  %925 = vmatprep.mubr.msk.f32.mxu1 %vm1045_vm0, %v1046_v7 }
 0x2b2   :  { %983 = vmatprep.subr.bf16.mxu1 %v1044_v4 }
 0x2b5   :  { %985 = vmatpush3.bf16.msra.mxu1 %v1108_v8 }
 0x2b6   :  { %992 = vmatprep.subr.bf16.mxu1 %v1044_v4 }
 0x2b7   :  { %v665_v32 = vld [vmem:[#allocation2 + $0x4] sm:$0x3] }
 0x2b8   :  { %v680_v33 = vmul.f32 %v1139_v15, %v665_v32 }
 0x2ba   :  { %v692_v34 = vsel %vm107_vm2, %v680_v33, 0.0 }
 0x2bb   :  { %693 = vadd.xlane.f32.xlu1 %v692_v34 }
 0x383   :  { %v338_v36 = vpop.f32.mrb[2].mxu1 }
 0x384   :  { %v342_v37 = vadd.f32 %v810_v35, %v338_v36  ;;  %v905_v38 = vpop.f32.mrb[3].mxu1 }
 0x386   :  { %1010 = vtanh.f32 %v342_v37 }
 0x390   :  { %v1011_v39 = vpop.eup %1010 }
 0x391   :  { %345 = vst.msk [vmem:[#allocation2 + $0x6] sm:$0x3] %vm107_vm2, %v1011_v39  ;;  %915 = vmatmul.mubr.msk.f32.vlgmr.msra.gmra.mrb[4].mxu0 %vm31_vm1, %v1011_v39 }
 0x392   :  { %988 = vmatpush3.bf16.msra.mxu0 %v1097_v5  ;;  %936 = vmatprep.mubr.msk.f32.mxu0 %vm1045_vm0, %v1046_v7 }
 0x393   :  { %989 = vmatprep.subr.bf16.mxu0 %v1044_v4 }
 0x396   :  { %991 = vmatpush3.bf16.msra.mxu0 %v1108_v8 }
 0x398   :  { %v666_v40 = vld [vmem:[#allocation2 + $0x6] sm:$0x3] }
 0x399   :  { %v681_v41 = vmul.f32 %v1139_v15, %v666_v40 }
 0x39b   :  { %v695_v42 = vsel %vm107_vm2, %v681_v41, 0.0 }
 0x39c   :  { %696 = vadd.xlane.f32.xlu1 %v695_v42 }
 0x464   :  { %v417_v44 = vpop.f32.mrb[4].mxu0 }
 0x465   :  { %v421_v45 = vadd.f32 %v812_v43, %v417_v44  ;;  %v916_v46 = vpop.f32.mrb[5].mxu0 }
 0x467   :  { %1012 = vtanh.f32 %v421_v45 }
 0x471   :  { %v1013_v47 = vpop.eup %1012 }
 0x472   :  { %424 = vst.msk [vmem:[#allocation2 + $0x8] sm:$0x3] %vm107_vm2, %v1013_v47  ;;  %926 = vmatmul.mubr.msk.f32.vlgmr.msra.gmra.mrb[4].mxu1 %vm31_vm1, %v1013_v47 }
 0x473   :  { %994 = vmatpush3.bf16.msra.mxu1 %v1097_v5  ;;  %947 = vmatprep.mubr.msk.f32.mxu1 %vm1045_vm0, %v1046_v7  ;;  %v818_v5 = vld [vmem:[%s1231_s0 + $0xe] sm:$0x3] }
 0x474   :  { %995 = vmatprep.subr.bf16.mxu1 %v1044_v4  ;;  %v821_v4 = vld [vmem:[#allocation3] ss:$0 sm:$0xff] }
 0x477   :  { %997 = vmatpush3.bf16.msra.mxu1 %v1108_v8 }
 0x479   :  { %v667_v48 = vld [vmem:[#allocation2 + $0x8] sm:$0x3] }
 0x47a   :  { %v682_v49 = vmul.f32 %v1139_v15, %v667_v48 }
 0x47c   :  { %v698_v50 = vsel %vm107_vm2, %v682_v49, 0.0 }
 0x47d   :  { %699 = vadd.xlane.f32.xlu0 %v698_v50 }
 0x545   :  { %v496_v52 = vpop.f32.mrb[4].mxu1 }
 0x546   :  { %v500_v53 = vadd.f32 %v814_v51, %v496_v52  ;;  %v927_v54 = vpop.f32.mrb[5].mxu1 }
 0x548   :  { %1014 = vtanh.f32 %v500_v53 }
 0x552   :  { %v1015_v55 = vpop.eup %1014 }
 0x553   :  { %503 = vst.msk [vmem:[#allocation2 + $0xa] sm:$0x3] %vm107_vm2, %v1015_v55  ;;  %937 = vmatmul.mubr.msk.f32.vlgmr.msra.gmra.mrb[6].mxu0 %vm31_vm1, %v1015_v55 }
 0x55a   :  { %v668_v56 = vld [vmem:[#allocation2 + $0xa] sm:$0x3] }
 0x55b   :  { %v683_v57 = vmul.f32 %v1139_v15, %v668_v56 }
 0x55d   :  { %v701_v58 = vsel %vm107_vm2, %v683_v57, 0.0 }
 0x55e   :  { %702 = vadd.xlane.f32.xlu1 %v701_v58 }
 0x626   :  { %v575_v61 = vpop.f32.mrb[6].mxu0 }
 0x627   :  { %v579_v62 = vadd.f32 %v816_v60, %v575_v61  ;;  %v938_v63 = vpop.f32.mrb[7].mxu0 }
 0x629   :  { %1016 = vtanh.f32 %v579_v62 }
 0x633   :  { %v1017_v0 = vpop.eup %1016 }
 0x634   :  { %582 = vst.msk [vmem:[#allocation2 + $0xc] sm:$0x3] %vm107_vm2, %v1017_v0  ;;  %948 = vmatmul.mubr.msk.f32.vlgmr.msra.gmra.mrb[6].mxu1 %vm31_vm1, %v1017_v0 }
 0x63b   :  { %v669_v1 = vld [vmem:[#allocation2 + $0xc] sm:$0x3] }
 0x63c   :  { %v684_v2 = vmul.f32 %v1139_v15, %v669_v1 }
 0x63e   :  { %v704_v3 = vsel %vm107_vm2, %v684_v2, 0.0 }
 0x63f   :  { %705 = vadd.xlane.f32.xlu0 %v704_v3 }
 0x655   :  { %717 = vperm.xlu0 %1003, %v821_v4  }
 0x707   :  { %v654_v6 = vpop.f32.mrb[6].mxu1 }
 0x708   :  { %v658_v7 = vadd.f32 %v818_v5, %v654_v6  ;;  %v949_v8 = vpop.f32.mrb[7].mxu1 }
 0x70a   :  { %1018 = vtanh.f32 %v658_v7 }
 0x714   :  { %v1019_v9 = vpop.eup %1018 }
 0x715   :  { %661 = vst.msk [vmem:[#allocation2 + $0xe] sm:$0x3] %vm107_vm2, %v1019_v9  ;;  %662 = vst.msk [vmem:[#allocation4] sm:$0x3] %vm107_vm2, %v1019_v9 }
 0x71c   :  { %v670_v10 = vld [vmem:[#allocation2 + $0xe] sm:$0x3] }
 0x71d   :  { %v685_v11 = vmul.f32 %v1139_v15, %v670_v10 }
 0x71f   :  { %v707_v12 = vsel %vm107_vm2, %v685_v11, 0.0 }
 0x720   :  { %708 = vadd.xlane.f32.xlu1 %v707_v12 }
 0x721   :  { %1031 = shalt.err (!%p1028_p4)
}
 0x722   :  { %s1032_s27 = scalar_lea.hbm %s1237_s6, 32 }
 0x723   :  { %p1033_p5 = scmp.ne.s32.totalorder %s1237_s6, %s1032_s27  ;;  %p1036_p6 = scmp.lt.u32.totalorder %s1032_s27, %s1237_s6 }
 0x725   :  { %p1038_p7 = pnand %p1036_p6, %p1033_p5 }
 0x727   :  { %1041 = shalt.err (!%p1038_p7)
}
 0x728   :  { %798 = dma.vmem_to_hbm [thread:$0]  %s796_s24, 32, %s1237_s6, [#allocation5]   ;;  %v688_v13 = vpop.xlane.xlu0 %687  ;;  %v736_v16 = vlaneseq  ;;  %v694_v24 = vpop.xlane.xlu1 %693  ;;  %vm770_vm3 = vcmask 1041409   ;;  %vm772_vm4 = vcmask 1042434   ;;  %vm774_vm5 = vcmask 1043459  }
 0x729   :  { %vm776_vm6 = vcmask 1044484   ;;  %vm778_vm7 = vcmask 1045509   ;;  %vm780_vm8 = vcmask 1046534   ;;  %vm782_vm9 = vcmask 1047559  }
 0x72a   :  { %v737_v18 = vand.u32 127, %v736_v16  ;;  %v739_v19 = vshrl.u32 %v736_v16, 7  ;;  %vm785_vm10 = vcmask 15360  }
 0x72c   :  { %v691_v14 = vpop.xlane.xlu0 %690  ;;  %v740_v21 = vsub.s32 %v737_v18, %v739_v19  ;;  %v697_v28 = vpop.xlane.xlu1 %696 }
 0x730   :  { %v700_v15 = vpop.xlane.xlu0 %699  ;;  %v703_v35 = vpop.xlane.xlu1 %702 }
 0x734   :  { %v706_v17 = vpop.xlane.xlu0 %705 }
 0x738   :  { %v718_v20 = vpop.permute.xlu0 %717 }
 0x739   :  { %v720_v22 = vadd.f32 %v718_v20, %v688_v13  ;;  %v721_v23 = vadd.f32 %v718_v20, %v691_v14  ;;  %v722_v25 = vadd.f32 %v718_v20, %v694_v24  ;;  %v723_v30 = vadd.f32 %v718_v20, %v697_v28 }
 0x73a   :  { %v724_v32 = vadd.f32 %v718_v20, %v700_v15  ;;  %v725_v36 = vadd.f32 %v718_v20, %v703_v35  ;;  %v726_v39 = vadd.f32 %v718_v20, %v706_v17 }
 0x73b   :  { %v741_v26 = vrot.slane %v720_v22, %v740_v21  ;;  %v745_v27 = vrot.slane %v721_v23, %v740_v21  ;;  %v749_v29 = vrot.slane %v722_v25, %v740_v21  ;;  %v753_v34 = vrot.slane %v723_v30, %v740_v21 }
 0x73c   :  { %v757_v38 = vrot.slane %v724_v32, %v740_v21  ;;  %v761_v41 = vrot.slane %v725_v36, %v740_v21  ;;  %v765_v45 = vrot.slane %v726_v39, %v740_v21 }
 0x73d   :  { %v771_v31 = vsel %vm770_vm3, %v745_v27, %v741_v26 }
 0x73e   :  { %v773_v33 = vsel %vm772_vm4, %v749_v29, %v771_v31 }
 0x73f   :  { %v775_v37 = vsel %vm774_vm5, %v753_v34, %v773_v33 }
 0x740   :  { %v777_v40 = vsel %vm776_vm6, %v757_v38, %v775_v37 }
 0x741   :  { %v779_v44 = vsel %vm778_vm7, %v761_v41, %v777_v40 }
 0x742   :  { %v781_v47 = vsel %vm780_vm8, %v765_v45, %v779_v44 }
 0x7ad   :  { %v709_v42 = vpop.xlane.xlu1 %708 }
 0x7ae   :  { %v727_v43 = vadd.f32 %v718_v20, %v709_v42 }
 0x7b0   :  { %v769_v46 = vrot.slane %v727_v43, %v740_v21 }
 0x7b2   :  { %v783_v48 = vsel %vm782_vm9, %v769_v46, %v781_v47 }
 0x7b3   :  { %786 = vst.msk [vmem:[%s1236_s5] sm:$0xff] %vm785_vm10, %v783_v48 }
 0x7b4   :  { %1042 = dma.done.wait [#allocation5], 32  }
 0x7b5   :  { %1043 = vsyncadd [#allocation5], 4294967264 }
 0x7b6   :  { %804 = vsyncpa [#allocation5], 1 }

</bundles_post_ra>
